<compile_context>
chip_gen: v6e
topology: v6e:2x2x1
jax: 0.10.0
libtpu: 0.0.40
codegen_flags: <defaults>
</compile_context>

<pallas_src>
import math
from functools import partial

import jax
import jax.numpy as jnp
from jax.experimental import pallas as pl
from jax.experimental.pallas import tpu as pltpu


def _peak_kernel(x_ref, w_ref, b_ref, xout_ref, logit_ref, *,
                 alpha, old_classes, num_classes):
    # x_ref:     (Bt, nc, S)   new-class input maps for Bt batch elements
    # w_ref:     (C, nc)       1x1 conv weight, zero rows for old classes
    # b_ref:     (C, 1)        1x1 conv bias, zero entries for old classes
    # xout_ref:  (Bt, C, S)    full conv output (old-class rows are exactly 0)
    # logit_ref: (Bt, C, 1)    full per-class logits (old-class rows exactly 0)
    Bt, nc, S = x_ref.shape
    C = num_classes

    x = x_ref[...].astype(jnp.float32)                  # cast in-kernel (VMEM)

    # ---- PAM: ReLU -> per-(b,c) spatial max -> alpha-threshold mask ----
    x = jnp.maximum(x, 0.0)
    peak = jnp.max(x, axis=2, keepdims=True)             # (Bt, nc, 1)  XLU reduce
    x = jnp.where(x < peak * jnp.float32(alpha), 0.0, x)

    # ---- extra_conv4: 1x1 conv to ALL num_classes output channels ----
    # Old-class weight rows / bias entries are zero, so old rows of xc == 0,
    # which is exactly the zero padding the PyTorch module concatenates.
    w = w_ref[...]                                       # (C, nc)
    bias = b_ref[...]                                    # (C, 1)
    if nc < 32:
        # VPU path: unrolled broadcast-FMAs over the (small) input-channel dim;
        # avoids padding a 3-wide contraction onto a 128/256-wide MXU.
        xc = None
        for i in range(nc):
            term = x[:, i:i + 1, :] * w[:, i:i + 1][None, :, :]   # (Bt, C, S)
            xc = term if xc is None else xc + term
        xc = xc + bias[None, :, :]
    else:
        # MXU path for wide contractions.
        xc = jnp.einsum("oi,bis->bos", w, x,
                        preferred_element_type=jnp.float32) + bias[None, :, :]

    # ---- fc: channel softmax restricted to the new classes + nGWP pooling ----
    ch = jax.lax.broadcasted_iota(jnp.int32, (1, C, 1), 1)
    is_new = ch >= old_classes                            # (1, C, 1)
    m = jnp.max(jnp.where(is_new, xc, jnp.float32(-jnp.inf)),
                axis=1, keepdims=True)                    # (Bt, 1, S)
    e = jnp.where(is_new, jnp.exp(xc - m), 0.0)           # masked exp (EUP)
    denom = jnp.sum(e, axis=1, keepdims=True)             # (Bt, 1, S)
    masks = e * pl.reciprocal(denom, approx=True)         # softmax over new rows

    num = jnp.sum(xc * masks, axis=2, keepdims=True)      # (Bt, C, 1)
    den = 1.0 + jnp.sum(masks, axis=2, keepdims=True)     # (Bt, C, 1)
    # Old rows: num == 0, den == 1  ->  logit == 0 (matches torch.cat zeros).
    logit_ref[...] = (num * pl.reciprocal(den, approx=True)).astype(logit_ref.dtype)
    xout_ref[...] = xc.astype(xout_ref.dtype)             # single aligned block store


def _pick_block_batch(B, nc, C, S, budget_bytes=8 * 1024 * 1024):
    """Largest divisor of B whose double-buffered in+out blocks fit the budget."""
    per_b = (nc * S + C * S + C) * 4                      # f32 bytes per batch element
    bt = 1
    for cand in range(1, B + 1):
        if B % cand == 0 and 2 * per_b * cand <= budget_bytes:
            bt = cand
    return bt


def peak_generator_forward(x, w, b, *, num_classes, old_classes, alpha):
    """Training-mode forward of PeakGenerator.

    x: (B, C_in, H, W) float (NCHW, like PyTorch)
    w: (new_classes, new_classes) 1x1 conv weight; b: (new_classes,) bias
    returns (logit (B, num_classes), x_maps (B, num_classes, H, W))
    """
    nc = num_classes - old_classes
    B, C_in, H, W = x.shape
    S = H * W
    C = num_classes
    out_dtype = x.dtype

    # Channel window + flatten.  Free when C_in == nc; otherwise one small
    # fused slice copy of just the new-class maps (input dtype preserved so
    # bf16 stays bf16 on the HBM wire; the kernel casts to f32 in VMEM).
    x_new = x[:, C_in - nc:, :, :].reshape(B, nc, S)

    # Pad conv params with zero rows for the old classes (parameter-sized op).
    w_pad = jnp.zeros((C, nc), jnp.float32).at[old_classes:, :].set(
        w.astype(jnp.float32))
    b_pad = jnp.zeros((C, 1), jnp.float32).at[old_classes:, 0].set(
        b.astype(jnp.float32))

    Bt = _pick_block_batch(B, nc, C, S)
    kernel = partial(_peak_kernel, alpha=float(alpha),
                     old_classes=old_classes, num_classes=C)

    itemsize = jnp.dtype(out_dtype).itemsize
    cost = pl.CostEstimate(
        flops=int(B * (2 * nc * C * S + 12 * C * S)),
        transcendentals=int(B * C * S),
        bytes_accessed=int(x_new.size * jnp.dtype(x_new.dtype).itemsize
                           + w_pad.size * 4 + b_pad.size * 4
                           + B * C * S * itemsize + B * C * itemsize),
    )

    x_full, logit = pl.pallas_call(
        kernel,
        out_shape=(
            jax.ShapeDtypeStruct((B, C, S), out_dtype),
            jax.ShapeDtypeStruct((B, C, 1), out_dtype),
        ),
        grid_spec=pltpu.PrefetchScalarGridSpec(
            num_scalar_prefetch=0,
            grid=(B // Bt,),
            in_specs=[
                pl.BlockSpec((Bt, nc, S), lambda bi: (bi, 0, 0)),
                pl.BlockSpec((C, nc), lambda bi: (0, 0)),   # constant index -> DMA'd once
                pl.BlockSpec((C, 1), lambda bi: (0, 0)),
            ],
            out_specs=[
                pl.BlockSpec((Bt, C, S), lambda bi: (bi, 0, 0)),
                pl.BlockSpec((Bt, C, 1), lambda bi: (bi, 0, 0)),
            ],
        ),
        compiler_params=pltpu.CompilerParams(
            dimension_semantics=("parallel",),
            vmem_limit_bytes=64 * 1024 * 1024,
        ),
        cost_estimate=cost,
    )(x_new, w_pad, b_pad)

    logit_full = logit[:, :, 0]                           # (B, C) — tiny squeeze
    x_maps = x_full.reshape(B, C, H, W)                   # free reshape
    return logit_full, x_maps


def _reference_forward(x, w, b, *, num_classes, old_classes, alpha):
    """Pure-JAX reference mirroring the PyTorch module (training path)."""
    nc = num_classes - old_classes
    B, _, H, W = x.shape
    xn = x[:, -nc:].astype(jnp.float32)
    xn = jnp.maximum(xn, 0.0)
    peak = jnp.max(xn, axis=(2, 3), keepdims=True)
    xn = jnp.where(xn < peak * alpha, 0.0, xn)
    xc = jnp.einsum("oi,bihw->bohw", w, xn) + b[None, :, None, None]
    flat = xc.reshape(B, nc, -1)
    masks = jax.nn.softmax(flat, axis=1)
    logit = (flat * masks).sum(-1) / (1.0 + masks.sum(-1))
    logit = jnp.concatenate([jnp.zeros((B, old_classes)), logit], axis=1)
    x_full = jnp.concatenate([jnp.zeros((B, old_classes, H, W)), xc], axis=1)
    return logit, x_full


if __name__ == "__main__":
    # Small, self-consistent shapes.
    B, C_in, H, W = 2, 8, 16, 16
    num_classes, old_classes, alpha = 8, 5, 0.7
    new_classes = num_classes - old_classes             # 3

    key = jax.random.PRNGKey(0)
    kx, kw = jax.random.split(key)
    x = jax.random.normal(kx, (B, C_in, H, W), dtype=jnp.float32)

    # Deterministic init matching _initialize_weights: normal(0, sqrt(2/n)),
    # n = kH*kW*out_channels = 1*1*new_classes; bias = 0.
    std = math.sqrt(2.0 / new_classes)
    w = std * jax.random.normal(kw, (new_classes, new_classes), dtype=jnp.float32)
    b = jnp.zeros((new_classes,), jnp.float32)

    logit, x_full = peak_generator_forward(
        x, w, b, num_classes=num_classes, old_classes=old_classes, alpha=alpha)
    jax.block_until_ready((logit, x_full))

    # Silent correctness check against the pure-JAX reference.  Logit tolerance
    # is relaxed slightly because the kernel uses EUP approximate reciprocals.
    ref_logit, ref_x = _reference_forward(
        x, w, b, num_classes=num_classes, old_classes=old_classes, alpha=alpha)
    assert logit.shape == (B, num_classes)
    assert x_full.shape == (B, num_classes, H, W)
    assert jnp.allclose(x_full, ref_x, atol=1e-4, rtol=1e-4)
    assert jnp.allclose(logit, ref_logit, atol=2e-3, rtol=2e-3)

    # TODO(synk): eval-mode cam_normalize (bilinear F.interpolate) has no clean
    # Pallas equivalent here; only the training-mode (logit, x) path is kernelized.
    print("KERNEL_OK")
</pallas_src>

<mosaic_0001>
module attributes {stable_mosaic.version = 11 : i64} {
  func.func @_peak_kernel(%arg0: i32, %arg1: memref<2x3x256xf32, #tpu.memory_space<vmem>>, %arg2: memref<8x3xf32, #tpu.memory_space<vmem>>, %arg3: memref<8x1xf32, #tpu.memory_space<vmem>>, %arg4: memref<2x8x256xf32, #tpu.memory_space<vmem>>, %arg5: memref<2x8x1xf32, #tpu.memory_space<vmem>>) attributes {dimension_semantics = [#tpu.dimension_semantics<parallel>], iteration_bounds = array<i64: 1>, scalar_prefetch = 0 : i64, scratch_operands = 0 : i64, tpu.core_type = #tpu.core_type<tc>, window_params = [{transform_indices = @transform_0, window_bounds = array<i64: 2, 3, 256>}, {pipeline_mode = #tpu.pipeline_mode<synchronous>, transform_indices = @transform_1, window_bounds = array<i64: 8, 3>}, {pipeline_mode = #tpu.pipeline_mode<synchronous>, transform_indices = @transform_2, window_bounds = array<i64: 8, 1>}, {transform_indices = @transform_3, window_bounds = array<i64: 2, 8, 256>}, {transform_indices = @transform_4, window_bounds = array<i64: 2, 8, 1>}]} {
    %c0 = arith.constant 0 : index
    %c0_0 = arith.constant 0 : index
    %c0_1 = arith.constant 0 : index
    %0 = vector.load %arg1[%c0, %c0_0, %c0_1] : memref<2x3x256xf32, #tpu.memory_space<vmem>>, vector<2x3x256xf32>
    %cst = arith.constant 0.000000e+00 : f32
    %1 = vector.broadcast %cst : f32 to vector<2x3x256xf32>
    %2 = arith.maximumf %0, %1 : vector<2x3x256xf32>
    %cst_2 = arith.constant dense<0xFF800000> : vector<2x3xf32>
    %3 = vector.multi_reduction <maximumf>, %2, %cst_2 [2] : vector<2x3x256xf32> to vector<2x3xf32>
    %4 = vector.shape_cast %3 : vector<2x3xf32> to vector<2x3x1xf32>
    %cst_3 = arith.constant 0.699999988 : f32
    %5 = vector.broadcast %cst_3 : f32 to vector<2x3x1xf32>
    %6 = arith.mulf %4, %5 : vector<2x3x1xf32>
    %7 = vector.broadcast %6 : vector<2x3x1xf32> to vector<2x3x256xf32>
    %8 = arith.cmpf olt, %2, %7 : vector<2x3x256xf32>
    %cst_4 = arith.constant 0.000000e+00 : f32
    %9 = vector.broadcast %cst_4 : f32 to vector<2x3x256xf32>
    %10 = arith.select %8, %9, %2 : vector<2x3x256xi1>, vector<2x3x256xf32>
    %c0_5 = arith.constant 0 : index
    %c0_6 = arith.constant 0 : index
    %11 = vector.load %arg2[%c0_5, %c0_6] : memref<8x3xf32, #tpu.memory_space<vmem>>, vector<8x3xf32>
    %c0_7 = arith.constant 0 : index
    %c0_8 = arith.constant 0 : index
    %12 = vector.load %arg3[%c0_7, %c0_8] : memref<8x1xf32, #tpu.memory_space<vmem>>, vector<8x1xf32>
    %13 = vector.extract_strided_slice %10 {offsets = [0, 0, 0], sizes = [2, 1, 256], strides = [1, 1, 1]} : vector<2x3x256xf32> to vector<2x1x256xf32>
    %14 = vector.extract_strided_slice %11 {offsets = [0, 0], sizes = [8, 1], strides = [1, 1]} : vector<8x3xf32> to vector<8x1xf32>
    %15 = vector.shape_cast %14 : vector<8x1xf32> to vector<1x8x1xf32>
    %16 = vector.broadcast %13 : vector<2x1x256xf32> to vector<2x8x256xf32>
    %17 = vector.broadcast %15 : vector<1x8x1xf32> to vector<2x8x256xf32>
    %18 = arith.mulf %16, %17 : vector<2x8x256xf32>
    %19 = vector.extract_strided_slice %10 {offsets = [0, 1, 0], sizes = [2, 1, 256], strides = [1, 1, 1]} : vector<2x3x256xf32> to vector<2x1x256xf32>
    %20 = vector.extract_strided_slice %11 {offsets = [0, 1], sizes = [8, 1], strides = [1, 1]} : vector<8x3xf32> to vector<8x1xf32>
    %21 = vector.shape_cast %20 : vector<8x1xf32> to vector<1x8x1xf32>
    %22 = vector.broadcast %19 : vector<2x1x256xf32> to vector<2x8x256xf32>
    %23 = vector.broadcast %21 : vector<1x8x1xf32> to vector<2x8x256xf32>
    %24 = arith.mulf %22, %23 : vector<2x8x256xf32>
    %25 = arith.addf %18, %24 : vector<2x8x256xf32>
    %26 = vector.extract_strided_slice %10 {offsets = [0, 2, 0], sizes = [2, 1, 256], strides = [1, 1, 1]} : vector<2x3x256xf32> to vector<2x1x256xf32>
    %27 = vector.extract_strided_slice %11 {offsets = [0, 2], sizes = [8, 1], strides = [1, 1]} : vector<8x3xf32> to vector<8x1xf32>
    %28 = vector.shape_cast %27 : vector<8x1xf32> to vector<1x8x1xf32>
    %29 = vector.broadcast %26 : vector<2x1x256xf32> to vector<2x8x256xf32>
    %30 = vector.broadcast %28 : vector<1x8x1xf32> to vector<2x8x256xf32>
    %31 = arith.mulf %29, %30 : vector<2x8x256xf32>
    %32 = arith.addf %25, %31 : vector<2x8x256xf32>
    %33 = vector.shape_cast %12 : vector<8x1xf32> to vector<1x8x1xf32>
    %34 = vector.broadcast %33 : vector<1x8x1xf32> to vector<2x8x256xf32>
    %35 = arith.addf %32, %34 : vector<2x8x256xf32>
    %36 = tpu.iota {dimensions = array<i32: 1>} : vector<1x8x1xi32>
    %c5_i32 = arith.constant 5 : i32
    %37 = vector.broadcast %c5_i32 : i32 to vector<1x8x1xi32>
    %38 = arith.cmpi sge, %36, %37 : vector<1x8x1xi32>
    %cst_9 = arith.constant 0xFF800000 : f32
    %39 = vector.shape_cast %38 : vector<1x8x1xi1> to vector<1x8x1xi1>
    %40 = vector.broadcast %39 : vector<1x8x1xi1> to vector<2x8x256xi1>
    %41 = vector.broadcast %cst_9 : f32 to vector<2x8x256xf32>
    %42 = arith.select %40, %35, %41 : vector<2x8x256xi1>, vector<2x8x256xf32>
    %cst_10 = arith.constant dense<0xFF800000> : vector<2x256xf32>
    %43 = vector.multi_reduction <maximumf>, %42, %cst_10 [1] : vector<2x8x256xf32> to vector<2x256xf32>
    %44 = vector.shape_cast %43 : vector<2x256xf32> to vector<2x1x256xf32>
    %45 = vector.broadcast %44 : vector<2x1x256xf32> to vector<2x8x256xf32>
    %46 = arith.subf %35, %45 : vector<2x8x256xf32>
    %47 = math.exp %46 : vector<2x8x256xf32>
    %cst_11 = arith.constant 0.000000e+00 : f32
    %48 = vector.shape_cast %38 : vector<1x8x1xi1> to vector<1x8x1xi1>
    %49 = vector.broadcast %48 : vector<1x8x1xi1> to vector<2x8x256xi1>
    %50 = vector.broadcast %cst_11 : f32 to vector<2x8x256xf32>
    %51 = arith.select %49, %47, %50 : vector<2x8x256xi1>, vector<2x8x256xf32>
    %cst_12 = arith.constant dense<0.000000e+00> : vector<2x256xf32>
    %52 = vector.multi_reduction <add>, %51, %cst_12 [1] : vector<2x8x256xf32> to vector<2x256xf32>
    %53 = vector.shape_cast %52 : vector<2x256xf32> to vector<2x1x256xf32>
    %54 = tpu.reciprocal %53 {approx = true} : vector<2x1x256xf32> -> vector<2x1x256xf32>
    %55 = vector.broadcast %54 : vector<2x1x256xf32> to vector<2x8x256xf32>
    %56 = arith.mulf %51, %55 : vector<2x8x256xf32>
    %57 = arith.mulf %35, %56 : vector<2x8x256xf32>
    %cst_13 = arith.constant dense<0.000000e+00> : vector<2x8xf32>
    %58 = vector.multi_reduction <add>, %57, %cst_13 [2] : vector<2x8x256xf32> to vector<2x8xf32>
    %59 = vector.shape_cast %58 : vector<2x8xf32> to vector<2x8x1xf32>
    %cst_14 = arith.constant dense<0.000000e+00> : vector<2x8xf32>
    %60 = vector.multi_reduction <add>, %56, %cst_14 [2] : vector<2x8x256xf32> to vector<2x8xf32>
    %61 = vector.shape_cast %60 : vector<2x8xf32> to vector<2x8x1xf32>
    %cst_15 = arith.constant 1.000000e+00 : f32
    %62 = vector.broadcast %cst_15 : f32 to vector<2x8x1xf32>
    %63 = arith.addf %62, %61 : vector<2x8x1xf32>
    %64 = tpu.reciprocal %63 {approx = true} : vector<2x8x1xf32> -> vector<2x8x1xf32>
    %65 = arith.mulf %59, %64 : vector<2x8x1xf32>
    %c0_16 = arith.constant 0 : index
    %c0_17 = arith.constant 0 : index
    %c0_18 = arith.constant 0 : index
    %66 = vector.load %arg5[%c0_16, %c0_17, %c0_18] : memref<2x8x1xf32, #tpu.memory_space<vmem>>, vector<2x8x1xf32>
    tpu.vector_store %arg5[%c0_16, %c0_17, %c0_18], %65 {strides = array<i32>} : memref<2x8x1xf32, #tpu.memory_space<vmem>>, vector<2x8x1xf32>,
    %c0_19 = arith.constant 0 : index
    %c0_20 = arith.constant 0 : index
    %c0_21 = arith.constant 0 : index
    %67 = vector.load %arg4[%c0_19, %c0_20, %c0_21] : memref<2x8x256xf32, #tpu.memory_space<vmem>>, vector<2x8x256xf32>
    tpu.vector_store %arg4[%c0_19, %c0_20, %c0_21], %35 {strides = array<i32>} : memref<2x8x256xf32, #tpu.memory_space<vmem>>, vector<2x8x256xf32>,
    return
  }
  func.func @transform_0(%arg0: i32) -> (i32, i32, i32) {
    %c0_i32 = arith.constant 0 : i32
    %c0_i32_0 = arith.constant 0 : i32
    %c0_i32_1 = arith.constant 0 : i32
    return %arg0, %c0_i32, %c0_i32_0 : i32, i32, i32
  }
  func.func @transform_1(%arg0: i32) -> (i32, i32) {
    %c0_i32 = arith.constant 0 : i32
    %c0_i32_0 = arith.constant 0 : i32
    %c0_i32_1 = arith.constant 0 : i32
    return %c0_i32, %c0_i32_0 : i32, i32
  }
  func.func @transform_2(%arg0: i32) -> (i32, i32) {
    %c0_i32 = arith.constant 0 : i32
    %c0_i32_0 = arith.constant 0 : i32
    %c0_i32_1 = arith.constant 0 : i32
    return %c0_i32, %c0_i32_0 : i32, i32
  }
  func.func @transform_3(%arg0: i32) -> (i32, i32, i32) {
    %c0_i32 = arith.constant 0 : i32
    %c0_i32_0 = arith.constant 0 : i32
    %c0_i32_1 = arith.constant 0 : i32
    return %arg0, %c0_i32, %c0_i32_0 : i32, i32, i32
  }
  func.func @transform_4(%arg0: i32) -> (i32, i32, i32) {
    %c0_i32 = arith.constant 0 : i32
    %c0_i32_0 = arith.constant 0 : i32
    %c0_i32_1 = arith.constant 0 : i32
    return %arg0, %c0_i32, %c0_i32_0 : i32, i32, i32
  }
}

</mosaic_0001>

<bundles_post_ra>
// kernel: tpu_custom_call.1
= control target key start
LH: loop header
LB: loop body
LE: loop exit
PB: predicated region body
PF: predicated region fallthrough
CT: control target
= control target key end

     0   :  { %vm27_vm0 = vcmask 1042432   ;;  %v400_v4 = vmov 0   ;;  %v401_v6 = vmov 2   ;;  %s507_s0 = inlined_call_operand.vmem [shape: f32[2,3,256], index: 0, kind: input, shape index: {}]   ;;  %s508_s1 = inlined_call_operand.vmem [shape: f32[8,3], index: 1, kind: input, shape index: {}]   ;;  %s509_s2 = inlined_call_operand.vmem [shape: f32[8,1], index: 2, kind: input, shape index: {}]   ;;  %s510_s3 = inlined_call_operand.hbm [shape: f32[2,8,256], index: 3, kind: output, shape index: {0}]   ;;  %s511_s4 = inlined_call_operand.vmem [shape: f32[2,8,1], index: 4, kind: output, shape index: {1}]  }
   0x1   :  { %v17_v0 = vld [vmem:[%s507_s0] sm:$0x77]  ;;  %v18_v1 = vld [vmem:[%s507_s0 + $0x8] sm:$0x77]  ;;  %353 = vset.pattern.permute.xlu1 %v400_v4  ;;  %355 = vset.pattern.permute.xlu0 %v401_v6 }
   0x2   :  { %v19_v2 = vmax.f32 %v17_v0, 0.0  ;;  %v20_v3 = vmax.f32 %v18_v1, 0.0  ;;  %v62_v5 = vld [vmem:[%s508_s1] sm:$0xff] }
   0x3   :  { %104 = vperm.xlu1 %353, %v62_v5  }
   0x4   :  { %10 = vsyncpa [#allocation3], 0  ;;  %v23_v7 = vcombine.high %v19_v2, %v19_v2  ;;  %v28_v8 = vsel %vm27_vm0, %v19_v2, -inf  ;;  %v24_v9 = vcombine.high %v20_v3, %v20_v3  ;;  %v33_v11 = vsel %vm27_vm0, %v20_v3, -inf  ;;  %v63_v16 = vld [vmem:[%s509_s2] sm:$0xff]  ;;  %s404_s2 = smov [#allocation2]  }
   0x5   :  { %v402_v14 = vmov 1   ;;  %v403_v17 = vmov 839922192   ;;  %v45_v19 = vlaneseq  ;;  %s331_s21 = sshll.u32 %s404_s2, 4  ;;  %s332_s21 = int_to_ptr.vmem [resolvable:$true] %s331_s21 }
   0x6   :  { %v29_v10 = vsel %vm27_vm0, %v23_v7, -inf  ;;  %v34_v12 = vsel %vm27_vm0, %v24_v9, -inf  ;;  %v43_v18 = vunpack.c.l.s4 %v403_v17  ;;  %s378_s22 = scalar_lea.vmem %s332_s21, 512  ;;  %p383_p1 = scmp.lt.s32.totalorder %s332_s21, %s332_s21 }
   0x7   :  { %v30_v13 = vmax.f32 %v28_v8, %v29_v10  ;;  %354 = vset.pattern.permute.xlu1 %v402_v14  ;;  %v35_v15 = vmax.f32 %v33_v11, %v34_v12  ;;  %v448_v21 = vshrl.u32 %v45_v19, 7  ;;  %p379_p0 = scmp.ne.s32.totalorder %s332_s21, %s378_s22  ;;  %p384_p2 = scmp.lt.s32.totalorder %s378_s22, %s378_s22 }
   0x8   :  { %148 = vperm.xlu1 %354, %v62_v5   ;;  %v44_v20 = vunpack.c.0.s8 %v43_v18 }
   0x9   :  { %31 = vmax.xlane.f32.xlu0 %v30_v13  ;;  %v68_v27 = vsub.s32 0, %v448_v21  ;;  %v72_v28 = vsub.s32 4, %v448_v21  ;;  %v113_v29 = vsub.s32 1, %v448_v21  ;;  %v117_v31 = vsub.s32 5, %v448_v21  ;;  %p385_p3 = por %p384_p2, %p383_p1 }
   0xa   :  { %v47_v22 = vsub.s32 %v44_v20, %v448_v21  ;;  %v161_v32 = vsub.s32 2, %v448_v21  ;;  %v165_v33 = vsub.s32 6, %v448_v21  ;;  %vm218_vm3 = vcmp.ge.s32.totalorder %v448_v21, 5 }
   0xb   :  { %p386_p4 = pnand %p385_p3, %p379_p0 }
   0xc   :  { %356 = vset.pattern.permute.xlu1 %v400_v4 }
   0xd   :  { %36 = vmax.xlane.f32.xlu0 %v35_v15  ;;  %209 = vperm.xlu1 %356, %v63_v16  }
  0x23   :  { %196 = vperm.xlu0 %355, %v62_v5  }
  0x27   :  { %357 = vset.pattern.permute.xlu0 %v400_v4 }
  0x7e   :  { %v105_v26 = vpop.permute.xlu1 %104 }
  0x83   :  { %v149_v45 = vpop.permute.xlu1 %148 }
  0x88   :  { %v210_v14 = vpop.permute.xlu1 %209 }
  0x92   :  { %v32_v23 = vpop.xlane.xlu0 %31 }
  0x93   :  { %v38_v24 = vmul.f32 0.7, %v32_v23 }
  0x95   :  { %v48_v25 = vrot.slane %v38_v24, %v47_v22 }
  0x96   :  { %v37_v30 = vpop.xlane.xlu0 %36 }
  0x97   :  { %vm58_vm1 = vcmp.lt.f32.partialorder %v19_v2, %v48_v25  ;;  %v39_v34 = vmul.f32 0.7, %v37_v30 }
  0x98   :  { %v60_v35 = vsel %vm58_vm1, 0.0, %v19_v2 }
  0x99   :  { %v55_v36 = vrot.slane %v39_v34, %v47_v22  ;;  %v69_v37 = vrot.slane %v60_v35, %v68_v27  ;;  %v73_v38 = vrot.slane %v60_v35, %v72_v28  ;;  %v114_v39 = vrot.slane %v60_v35, %v113_v29 }
  0x9a   :  { %v118_v40 = vrot.slane %v60_v35, %v117_v31  ;;  %v162_v41 = vrot.slane %v60_v35, %v161_v32  ;;  %v166_v42 = vrot.slane %v60_v35, %v165_v33 }
  0x9b   :  { %vm59_vm2 = vcmp.lt.f32.partialorder %v20_v3, %v55_v36  ;;  %v89_v43 = vrot.slane %v69_v37, %v68_v27  ;;  %v93_v44 = vrot.slane %v73_v38, %v68_v27  ;;  %v134_v46 = vrot.slane %v114_v39, %v113_v29 }
  0x9c   :  { %v61_v47 = vsel %vm59_vm2, 0.0, %v20_v3  ;;  %v138_v48 = vrot.slane %v118_v40, %v113_v29  ;;  %v182_v49 = vrot.slane %v162_v41, %v161_v32  ;;  %v186_v50 = vrot.slane %v166_v42, %v161_v32 }
  0x9d   :  { %v77_v51 = vrot.slane %v61_v47, %v68_v27  ;;  %v81_v52 = vrot.slane %v61_v47, %v72_v28  ;;  %v107_v53 = vmul.f32 %v105_v26, %v89_v43  ;;  %v108_v54 = vmul.f32 %v105_v26, %v93_v44 }
  0x9e   :  { %v122_v55 = vrot.slane %v61_v47, %v113_v29  ;;  %v126_v56 = vrot.slane %v61_v47, %v117_v31  ;;  %v151_v57 = vmul.f32 %v149_v45, %v134_v46  ;;  %v152_v58 = vmul.f32 %v149_v45, %v138_v48  ;;  %v197_v63 = vpop.permute.xlu0 %196 }
  0x9f   :  { %v97_v59 = vrot.slane %v77_v51, %v68_v27  ;;  %v101_v60 = vrot.slane %v81_v52, %v68_v27  ;;  %v170_v61 = vrot.slane %v61_v47, %v161_v32  ;;  %v174_v62 = vrot.slane %v61_v47, %v165_v33 }
  0xa0   :  { %v142_v0 = vrot.slane %v122_v55, %v113_v29  ;;  %v146_v1 = vrot.slane %v126_v56, %v113_v29  ;;  %v155_v2 = vadd.f32 %v151_v57, %v107_v53  ;;  %v156_v3 = vadd.f32 %v152_v58, %v108_v54 }
  0xa1   :  { %v109_v4 = vmul.f32 %v105_v26, %v97_v59  ;;  %v110_v5 = vmul.f32 %v105_v26, %v101_v60  ;;  %v190_v6 = vrot.slane %v170_v61, %v161_v32  ;;  %v194_v7 = vrot.slane %v174_v62, %v161_v32 }
  0xa2   :  { %v153_v8 = vmul.f32 %v149_v45, %v142_v0  ;;  %v154_v9 = vmul.f32 %v149_v45, %v146_v1  ;;  %v199_v10 = vmul.f32 %v197_v63, %v182_v49  ;;  %v200_v11 = vmul.f32 %v197_v63, %v186_v50 }
  0xa3   :  { %v201_v12 = vmul.f32 %v197_v63, %v190_v6  ;;  %v202_v13 = vmul.f32 %v197_v63, %v194_v7 }
  0xa4   :  { %v157_v15 = vadd.f32 %v153_v8, %v109_v4  ;;  %v158_v16 = vadd.f32 %v154_v9, %v110_v5  ;;  %v203_v17 = vadd.f32 %v199_v10, %v155_v2  ;;  %v204_v18 = vadd.f32 %v200_v11, %v156_v3 }
  0xa6   :  { %v205_v19 = vadd.f32 %v201_v12, %v157_v15  ;;  %v206_v20 = vadd.f32 %v202_v13, %v158_v16  ;;  %v458_v22 = vadd.f32 %v210_v14, %v203_v17  ;;  %v460_v23 = vadd.f32 %v210_v14, %v204_v18 }
  0xa8   :  { %v462_v24 = vadd.f32 %v210_v14, %v205_v19  ;;  %v464_v25 = vadd.f32 %v210_v14, %v206_v20  ;;  %v221_v26 = vsel %vm218_vm3, %v458_v22, -inf  ;;  %v222_v27 = vsel %vm218_vm3, %v460_v23, -inf  ;;  %322 = vst [vmem:[#allocation2] sm:$0xff] %v458_v22  ;;  %323 = vst [vmem:[#allocation2 + $0x8] sm:$0xff] %v460_v23 }
  0xa9   :  { %v225_v28 = vrot.slane %v221_v26, 4  ;;  %v231_v29 = vrot.slane %v222_v27, 4 }
  0xaa   :  { %v223_v30 = vsel %vm218_vm3, %v462_v24, -inf  ;;  %v224_v31 = vsel %vm218_vm3, %v464_v25, -inf  ;;  %324 = vst [vmem:[#allocation2 + $0x10] sm:$0xff] %v462_v24  ;;  %325 = vst [vmem:[#allocation2 + $0x18] sm:$0xff] %v464_v25 }
  0xab   :  { %v226_v32 = vmax.f32 %v221_v26, %v225_v28  ;;  %v232_v33 = vmax.f32 %v222_v27, %v231_v29  ;;  %v237_v34 = vrot.slane %v223_v30, 4  ;;  %v243_v35 = vrot.slane %v224_v31, 4 }
  0xad   :  { %v227_v36 = vrot.slane %v226_v32, 2  ;;  %v233_v37 = vrot.slane %v232_v33, 2  ;;  %v238_v38 = vmax.f32 %v223_v30, %v237_v34  ;;  %v244_v39 = vmax.f32 %v224_v31, %v243_v35 }
  0xaf   :  { %v228_v40 = vmax.f32 %v226_v32, %v227_v36  ;;  %v234_v41 = vmax.f32 %v232_v33, %v233_v37  ;;  %v239_v42 = vrot.slane %v238_v38, 2  ;;  %v245_v43 = vrot.slane %v244_v39, 2 }
  0xb1   :  { %v229_v44 = vrot.slane %v228_v40, 1  ;;  %v235_v45 = vrot.slane %v234_v41, 1  ;;  %v240_v46 = vmax.f32 %v238_v38, %v239_v42  ;;  %v246_v47 = vmax.f32 %v244_v39, %v245_v43 }
  0xb3   :  { %v230_v48 = vmax.f32 %v228_v40, %v229_v44  ;;  %v236_v49 = vmax.f32 %v234_v41, %v235_v45  ;;  %v241_v50 = vrot.slane %v240_v46, 1  ;;  %v247_v51 = vrot.slane %v246_v47, 1 }
  0xb5   :  { %v242_v52 = vmax.f32 %v240_v46, %v241_v50  ;;  %v248_v53 = vmax.f32 %v246_v47, %v247_v51  ;;  %v249_v54 = vsub.f32 %v458_v22, %v230_v48  ;;  %v250_v55 = vsub.f32 %v460_v23, %v236_v49 }
  0xb7   :  { %v251_v56 = vsub.f32 %v462_v24, %v242_v52  ;;  %v252_v57 = vsub.f32 %v464_v25, %v248_v53  ;;  %v253_v58 = vmul.f32 1.442695, %v249_v54  ;;  %v255_v59 = vmul.f32 1.442695, %v250_v55 }
  0xb9   :  { %358 = vpow2.f32 %v253_v58  ;;  %v257_v60 = vmul.f32 1.442695, %v251_v56  ;;  %v259_v61 = vmul.f32 1.442695, %v252_v57 }
  0xba   :  { %360 = vpow2.f32 %v255_v59 }
  0xbb   :  { %362 = vpow2.f32 %v257_v60 }
  0xbc   :  { %364 = vpow2.f32 %v259_v61 }
  0xc6   :  { %v359_v62 = vpop.eup %358 }
  0xc7   :  { %v361_v63 = vpop.eup %360  ;;  %v261_v0 = vsel %vm218_vm3, %v359_v62, 0.0 }
  0xc8   :  { %v363_v1 = vpop.eup %362  ;;  %v262_v2 = vsel %vm218_vm3, %v361_v63, 0.0  ;;  %v265_v3 = vrot.slane %v261_v0, 4 }
  0xc9   :  { %v365_v4 = vpop.eup %364  ;;  %v271_v5 = vrot.slane %v262_v2, 4  ;;  %v263_v6 = vsel %vm218_vm3, %v363_v1, 0.0 }
  0xca   :  { %v266_v7 = vadd.f32 %v265_v3, %v261_v0  ;;  %v264_v8 = vsel %vm218_vm3, %v365_v4, 0.0  ;;  %v277_v9 = vrot.slane %v263_v6, 4 }
  0xcb   :  { %v272_v10 = vadd.f32 %v271_v5, %v262_v2  ;;  %v283_v11 = vrot.slane %v264_v8, 4 }
  0xcc   :  { %v267_v12 = vrot.slane %v266_v7, 2  ;;  %v278_v13 = vadd.f32 %v277_v9, %v263_v6 }
  0xcd   :  { %v273_v14 = vrot.slane %v272_v10, 2  ;;  %v284_v15 = vadd.f32 %v283_v11, %v264_v8 }
  0xce   :  { %v268_v16 = vadd.f32 %v267_v12, %v266_v7  ;;  %v279_v17 = vrot.slane %v278_v13, 2 }
  0xcf   :  { %v274_v18 = vadd.f32 %v273_v14, %v272_v10  ;;  %v285_v19 = vrot.slane %v284_v15, 2 }
  0xd0   :  { %v269_v20 = vrot.slane %v268_v16, 1  ;;  %v280_v26 = vadd.f32 %v279_v17, %v278_v13 }
  0xd1   :  { %v275_v27 = vrot.slane %v274_v18, 1  ;;  %v286_v28 = vadd.f32 %v285_v19, %v284_v15 }
  0xd2   :  { %v270_v29 = vadd.f32 %v269_v20, %v268_v16  ;;  %v281_v30 = vrot.slane %v280_v26, 1 }
  0xd3   :  { %v276_v31 = vadd.f32 %v275_v27, %v274_v18  ;;  %v287_v21 = vrot.slane %v286_v28, 1 }
  0xd4   :  { %366 = vrcp.f32 %v270_v29  ;;  %v282_v32 = vadd.f32 %v281_v30, %v280_v26 }
  0xd5   :  { %368 = vrcp.f32 %v276_v31  ;;  %v288_v33 = vadd.f32 %v287_v21, %v286_v28 }
  0xd6   :  { %370 = vrcp.f32 %v282_v32 }
  0xd7   :  { %372 = vrcp.f32 %v288_v33 }
  0xe1   :  { %v367_v34 = vpop.eup %366 }
  0xe2   :  { %v369_v35 = vpop.eup %368  ;;  %v293_v36 = vmul.f32 %v367_v34, %v261_v0 }
  0xe3   :  { %v371_v37 = vpop.eup %370  ;;  %v294_v38 = vmul.f32 %v369_v35, %v262_v2 }
  0xe4   :  { %v373_v39 = vpop.eup %372  ;;  %v297_v40 = vmul.f32 %v293_v36, %v458_v22  ;;  %v295_v41 = vmul.f32 %v371_v37, %v263_v6 }
  0xe5   :  { %v307_v42 = vadd.f32 %v294_v38, %v293_v36  ;;  %v298_v43 = vmul.f32 %v294_v38, %v460_v23  ;;  %v296_v44 = vmul.f32 %v373_v39, %v264_v8 }
  0xe6   :  { %v299_v45 = vmul.f32 %v295_v41, %v462_v24 }
  0xe7   :  { %308 = vadd.xlane.f32.xlu1 %v307_v42  ;;  %v301_v46 = vadd.f32 %v298_v43, %v297_v40  ;;  %v310_v47 = vadd.f32 %v296_v44, %v295_v41  ;;  %v300_v48 = vmul.f32 %v296_v44, %v464_v25 }
  0xe9   :  { %302 = vadd.xlane.f32.xlu0 %v301_v46  ;;  %v304_v49 = vadd.f32 %v300_v48, %v299_v45 }
  0xeb   :  { %311 = vadd.xlane.f32.xlu1 %v310_v47 }
  0xef   :  { %305 = vadd.xlane.f32.xlu1 %v304_v49 }
  0xf0   :  { %389 = shalt.err (!%p386_p4)
}
  0xf1   :  { %s405_s23 = smov 256   ;;  %s406_s24 = smov 16   ;;  %vm319_vm4 = vcmask 7168  }
  0xf2   :  { %337 = dma.vmem_to_hbm [thread:$0]  %s332_s21, 512, %s510_s3, [#allocation3], %s405_s23, %s405_s23, %s406_s24  }
 0x170   :  { %v309_v22 = vpop.xlane.xlu1 %308 }
 0x171   :  { %v313_v23 = vadd.f32 1.0, %v309_v22 }
 0x172   :  { %v303_v51 = vpop.xlane.xlu0 %302 }
 0x173   :  { %374 = vrcp.f32 %v313_v23 }
 0x174   :  { %v312_v24 = vpop.xlane.xlu1 %311 }
 0x175   :  { %v314_v25 = vadd.f32 1.0, %v312_v24 }
 0x177   :  { %376 = vrcp.f32 %v314_v25 }
 0x178   :  { %v306_v54 = vpop.xlane.xlu1 %305 }
 0x180   :  { %v375_v50 = vpop.eup %374 }
 0x181   :  { %v317_v52 = vmul.f32 %v375_v50, %v303_v51 }
 0x183   :  { %320 = vst.msk [vmem:[%s511_s4] sm:$0xff] %vm319_vm4, %v317_v52 }
 0x184   :  { %v377_v53 = vpop.eup %376 }
 0x185   :  { %v318_v55 = vmul.f32 %v377_v53, %v306_v54 }
 0x187   :  { %321 = vst.msk [vmem:[%s511_s4 + $0x8] sm:$0xff] %vm319_vm4, %v318_v55 }
 0x188   :  { %398 = dma.done.wait [#allocation3], 512  }
 0x189   :  { %399 = vsyncadd [#allocation3], 4294966784 }
 0x18a   :  { %345 = vsyncpa [#allocation3], 1 }

</bundles_post_ra>
